<compile_context>
chip_gen: v7x
topology: tpu7x:2x2x1
jax: 0.10.0
libtpu: 0.0.40
codegen_flags: <defaults>
</compile_context>

<pallas_src>
import jax
import jax.numpy as jnp
import numpy as np
from jax.experimental import pallas as pl
from jax.experimental.pallas import tpu as pltpu


def _round_up(n, m):
    return ((n + m - 1) // m) * m


def _pick_block(dim, granule, max_block):
    """Largest multiple of `granule` that divides `dim` and is <= max_block.

    `dim` is assumed to already be a multiple of `granule` (the wrapper pads).
    """
    best = granule
    limit = min(dim, max(granule, max_block))
    m = granule
    while m <= limit:
        if dim % m == 0:
            best = m
        m += granule
    return best


def _affine_kernel(x_ref, params_ref, o_ref):
    # x_ref:      VMEM (row_block, col_block) tile of the flattened input
    # params_ref: VMEM (row_block, 2) f32 per-row [scale, shift]
    # o_ref:      VMEM (row_block, col_block) output tile (aliases the input tile)
    x = x_ref[...].astype(jnp.float32)
    params = params_ref[...]
    scale = params[:, 0:1]
    shift = params[:, 1:2]
    o_ref[...] = (x * scale + shift).astype(o_ref.dtype)


def _apply_affine(x, scale, shift):
    """fn(x) = x * scale[c] + shift[c], as a lane-dense, in-place Pallas kernel."""
    B, C, H, W = x.shape
    rows, cols = B * C, H * W
    dtype = x.dtype
    itemsize = jnp.dtype(dtype).itemsize
    # Dtype-aware sublane granule: 8 for f32, 16 for bf16, 32 for int8/fp8.
    granule = max(8, 32 // itemsize)

    x2 = x.reshape(rows, cols)

    # Per-row parameters in the flattened layout (row r -> channel r % C),
    # packed as a single (rows, 2) f32 stream: [:, 0] = scale, [:, 1] = shift.
    params = jnp.stack(
        [jnp.tile(scale.astype(jnp.float32), B),
         jnp.tile(shift.astype(jnp.float32), B)],
        axis=1,
    )

    # Pad once in the wrapper when the flattened slab is unaligned, slice back after.
    rows_p = _round_up(rows, granule)
    cols_p = _round_up(cols, 128)
    padded = (rows_p != rows) or (cols_p != cols)
    if padded:
        x2 = jnp.pad(x2, ((0, rows_p - rows), (0, cols_p - cols)))
        if rows_p != rows:
            params = jnp.pad(params, ((0, rows_p - rows), (0, 0)))

    # ~4 MiB per x tile: roofline is flat past ~1 MiB; 2 in + 2 out double-buffered
    # tiles (~16 MiB) stay under v7x's 32 MiB scoped / 64 MiB physical VMEM.
    target_bytes = 4 * 1024 * 1024
    col_block = _pick_block(cols_p, 128, 2048)
    max_rows = max(granule, target_bytes // max(1, col_block * itemsize))
    row_block = _pick_block(rows_p, granule, max_rows)

    # Megacore (v7x): make sure there are >= 2 blocks along a "parallel" axis
    # whenever the shape allows, so both TensorCores get work.
    if (rows_p // row_block) * (cols_p // col_block) < 2:
        if cols_p >= 256:
            col_block = _pick_block(cols_p, 128, col_block // 2)
        elif rows_p >= 2 * granule:
            row_block = _pick_block(rows_p, granule, row_block // 2)

    grid = (rows_p // row_block, cols_p // col_block)

    out2 = pl.pallas_call(
        _affine_kernel,
        out_shape=jax.ShapeDtypeStruct((rows_p, cols_p), dtype),
        grid=grid,
        in_specs=[
            pl.BlockSpec((row_block, col_block), lambda i, j: (i, j)),
            # Constant along j (the fastest grid axis) -> fetched once per row-band.
            pl.BlockSpec((row_block, 2), lambda i, j: (i, 0)),
        ],
        out_specs=pl.BlockSpec((row_block, col_block), lambda i, j: (i, j)),
        # Write the result in place over the input slab (elementwise, same tile map).
        input_output_aliases={0: 0},
        compiler_params=pltpu.CompilerParams(
            dimension_semantics=("parallel", "parallel"),
            vmem_limit_bytes=32 * 1024 * 1024,
        ),
    )(x2, params)

    if padded:
        out2 = out2[:rows, :cols]
    return out2.reshape(B, C, H, W)


def _random_apply_impl(x, scale, shift, p, key):
    """RandomApply(fn=per-channel affine, p=p).

    The coin flip is resolved in the wrapper: when the identity branch is taken
    (probability 1-p) no kernel runs; with x donated at the jit boundary and the
    pallas_call aliasing input 0 -> output 0, neither branch copies x through HBM.
    """
    # PyTorch: `if random.random() > p: return x` -> apply fn with probability p.
    u = jax.random.uniform(key, (), dtype=jnp.float32)
    do_apply = u <= jnp.asarray(p, jnp.float32)

    return jax.lax.cond(
        do_apply,
        lambda xx: _apply_affine(xx, scale, shift),
        lambda xx: xx,
        x,
    )


# Donate x so lax.cond / pallas_call can alias it instead of copying it.
random_apply = jax.jit(_random_apply_impl, donate_argnums=(0,))


if __name__ == "__main__":
    key = jax.random.PRNGKey(0)
    k_x, k_coin = jax.random.split(key)

    B, C, H, W = 2, 4, 16, 16
    x = jax.random.normal(k_x, (B, C, H, W), dtype=jnp.float32)
    x_np = np.asarray(x)  # keep a host copy: x device buffers get donated per call

    # Deterministic parameters for the wrapped `fn` (per-channel affine).
    scale = jnp.linspace(0.5, 2.0, C, dtype=jnp.float32)
    shift = jnp.linspace(-0.25, 0.25, C, dtype=jnp.float32)

    applied_ref = (
        x_np * np.asarray(scale).reshape(1, C, 1, 1)
        + np.asarray(shift).reshape(1, C, 1, 1)
    )

    # 1) Deterministically exercise the apply path (p=1.0 -> fn always applied).
    out_apply = jax.block_until_ready(
        random_apply(jnp.asarray(x_np), scale, shift, 1.0, k_coin)
    )
    np.testing.assert_allclose(
        np.asarray(out_apply), applied_ref, rtol=1e-6, atol=1e-6
    )

    # 2) Deterministically exercise the identity path (p=0.0 -> fn never applied).
    out_id = jax.block_until_ready(
        random_apply(jnp.asarray(x_np), scale, shift, 0.0, k_coin)
    )
    np.testing.assert_allclose(np.asarray(out_id), x_np, rtol=0, atol=0)

    # 3) Actual random coin at p=0.5, checked against a reference drawing the same coin.
    p = 0.5
    out = jax.block_until_ready(
        random_apply(jnp.asarray(x_np), scale, shift, p, k_coin)
    )
    u = float(jax.random.uniform(k_coin, (), dtype=jnp.float32))
    ref = x_np if u > p else applied_ref
    np.testing.assert_allclose(np.asarray(out), ref, rtol=1e-6, atol=1e-6)

    print("KERNEL_OK")
</pallas_src>

<mosaic_0001>
module attributes {stable_mosaic.version = 11 : i64} {
  func.func @_affine_kernel(%arg0: i32, %arg1: i32, %arg2: memref<8x128xf32, #tpu.memory_space<vmem>>, %arg3: memref<8x2xf32, #tpu.memory_space<vmem>>, %arg4: memref<8x128xf32, #tpu.memory_space<vmem>>) attributes {dimension_semantics = [#tpu.dimension_semantics<parallel>, #tpu.dimension_semantics<parallel>], iteration_bounds = array<i64: 1, 2>, scalar_prefetch = 0 : i64, scratch_operands = 0 : i64, tpu.core_type = #tpu.core_type<tc>, window_params = [{transform_indices = @transform_0, window_bounds = array<i64: 8, 128>}, {transform_indices = @transform_1, window_bounds = array<i64: 8, 2>}, {transform_indices = @transform_2, window_bounds = array<i64: 8, 128>}]} {
    %c0 = arith.constant 0 : index
    %c0_0 = arith.constant 0 : index
    %0 = vector.load %arg2[%c0, %c0_0] : memref<8x128xf32, #tpu.memory_space<vmem>>, vector<8x128xf32>
    %c0_1 = arith.constant 0 : index
    %c0_2 = arith.constant 0 : index
    %1 = vector.load %arg3[%c0_1, %c0_2] : memref<8x2xf32, #tpu.memory_space<vmem>>, vector<8x2xf32>
    %2 = vector.extract_strided_slice %1 {offsets = [0, 0], sizes = [8, 1], strides = [1, 1]} : vector<8x2xf32> to vector<8x1xf32>
    %3 = vector.extract_strided_slice %1 {offsets = [0, 1], sizes = [8, 1], strides = [1, 1]} : vector<8x2xf32> to vector<8x1xf32>
    %4 = vector.broadcast %2 : vector<8x1xf32> to vector<8x128xf32>
    %5 = arith.mulf %0, %4 : vector<8x128xf32>
    %6 = vector.broadcast %3 : vector<8x1xf32> to vector<8x128xf32>
    %7 = arith.addf %5, %6 : vector<8x128xf32>
    %c0_3 = arith.constant 0 : index
    %c0_4 = arith.constant 0 : index
    %8 = vector.load %arg4[%c0_3, %c0_4] : memref<8x128xf32, #tpu.memory_space<vmem>>, vector<8x128xf32>
    tpu.vector_store %arg4[%c0_3, %c0_4], %7 {strides = array<i32>} : memref<8x128xf32, #tpu.memory_space<vmem>>, vector<8x128xf32>,
    return
  }
  func.func @transform_0(%arg0: i32, %arg1: i32) -> (i32, i32) {
    %c0_i32 = arith.constant 0 : i32
    return %arg0, %arg1 : i32, i32
  }
  func.func @transform_1(%arg0: i32, %arg1: i32) -> (i32, i32) {
    %c0_i32 = arith.constant 0 : i32
    %c0_i32_0 = arith.constant 0 : i32
    return %arg0, %c0_i32 : i32, i32
  }
  func.func @transform_2(%arg0: i32, %arg1: i32) -> (i32, i32) {
    %c0_i32 = arith.constant 0 : i32
    return %arg0, %arg1 : i32, i32
  }
}

</mosaic_0001>

<bundles_post_ra>
// kernel: tile.13
= control target key start
LH: loop header
LB: loop body
LE: loop exit
PB: predicated region body
PF: predicated region fallthrough
CT: control target
= control target key end

     0   :  { %s22_s0 = inlined_call_operand.vmem [shape: f32[4], index: 0, kind: input, shape index: {}]   ;;  %s23_s1 = inlined_call_operand.vmem [shape: f32[2,4], index: 1, kind: output, shape index: {}]  }
   0x1   :  { %v4_v0 = vld [vmem:[%s22_s0] ss:$0 sm:$0xff] }
   0x2   :  { %5 = vst [vmem:[%s23_s1] sm:$0x3] %v4_v0 }

// kernel: tile.18
= control target key start
LH: loop header
LB: loop body
LE: loop exit
PB: predicated region body
PF: predicated region fallthrough
CT: control target
= control target key end

     0   :  { %vm7_vm0 = vcmask 31744   ;;  %vm13_vm1 = vcmask 64544   ;;  %s39_s0 = inlined_call_operand.vmem [shape: f32[2,4], index: 0, kind: input, shape index: {}]   ;;  %s40_s1 = inlined_call_operand.vmem [shape: f32[8,1], index: 1, kind: output, shape index: {}]  }
   0x1   :  { %v4_v0 = vld [vmem:[%s39_s0] sm:$0x3]  ;;  %s22_s0 = smov 4  }
   0x2   :  { %5 = vst [vmem:[#allocation1] sm:$0x3] %v4_v0 }
   0x9   :  { %v10_v1 = vld [vmem:[#allocation1 + $0x1] sm:$0x1]   ;;  %v6_v2 = vld [vmem:[#allocation1] sm:$0x1]  }
   0xa   :  { %11 = vrot.lane.b32.xlu0 %v10_v1, %s22_s0  ;;  %8 = vst.msk [vmem:[#allocation0] sm:$0x1] %vm7_vm0, %v6_v2  }
  0x7c   :  { %v12_v3 = vpop.permute.xlu0 %11  }
  0x7d   :  { %14 = vst.msk [vmem:[#allocation0] sm:$0x1] %vm13_vm1, %v12_v3  }
  0x84   :  { %v18_v4 = vld [vmem:[#allocation0] sm:$0x1] }
  0x85   :  { %20 = vst [vmem:[%s40_s1] sm:$0x1] %v18_v4 }

// kernel: branch_1_fun.1
= control target key start
LH: loop header
LB: loop body
LE: loop exit
PB: predicated region body
PF: predicated region fallthrough
CT: control target
= control target key end

     0   :  { %s384_s9 = smov 0   ;;  %s386_s10 = smov 0   ;;  %s417_s0 = inlined_call_operand.vmem [shape: f32[8,256], index: 0, kind: input, shape index: {}, may-alias: {0,2}]   ;;  %s418_s1 = inlined_call_operand.vmem [shape: f32[8,2], index: 1, kind: input, shape index: {}]   ;;  %s419_s2 = inlined_call_operand.vmem [shape: f32[8,256], index: 2, kind: output, shape index: {}, may-alias: {0,2}]  }
   0x1   :  { %s388_s11 = smov 0  }
   0x2 LB: > { %s21_s12 = sadd.s32 1, %s361_s10  ;;  %p310_p0 = scmp.ge.s32.totalorder %s365_s11, 1  ;;  %s365_s11 = sphi %s388_s11, %s12_s11   ;;  %s361_s10 = sphi %s386_s10, %s421_s10   ;;  %s357_s9 = sphi %s384_s9, %s420_s9  }
   0x3   : > { %p22_p1 = scmp.ge.s32.totalorder %s21_s12, 2  ;;  %p140_p2 = scmp.lt.s32.totalorder %s365_s11, 3 }
   0x5   : > { %s423_s12 = smov (%p22_p1, %s21_s12), 0  ;;  %p141_p3 = pnand %p310_p0, %p140_p2 }
   0x6   : > { %v193_v0 = vld [vmem:[%s418_s1] sm:$0xff] (!%p141_p3)  ;;  %v367_v1 = vmov (!%p141_p3), 0   ;;  %v368_v2 = vmov (!%p141_p3), 1   ;;  %p174_p4 = scmp.lt.s32.totalorder (!%p141_p3), %s357_s9, 1 }
   0x7   : > { %144 = sbr.rel (%p141_p3) target bundleno = 144 (0x90), region = 28  ;;  %341 = vset.pattern.permute.xlu0 (!%p141_p3), %v367_v1 }
   0x8   : > { %196 = vperm.xlu0 (!%p141_p3), %341, %v193_v0  }
   0xc   : > { %342 = vset.pattern.permute.xlu0 (!%p141_p3), %v368_v2 }
   0xd   : > { %201 = vperm.xlu0 (!%p141_p3), %342, %v193_v0  }
   0xe   : > { %s425_s9 = smov (!%p174_p4, %s357_s9), 1 }
   0xf   : > { %s311_s15 = sshll.u32 %s425_s9, 3 }
  0x10   : > { %s179_s18 = scalar_lea.vmem %s417_s0, %s311_s15  ;;  %s191_s21 = scalar_lea.vmem %s419_s2, %s311_s15 }
  0x11   : > { %v192_v4 = vld [vmem:[%s179_s18] sm:$0xff] }
  0x87   : > { %v197_v3 = vpop.permute.xlu0 %196 }
  0x88   : > { %v199_v5 = vmul.f32 %v197_v3, %v192_v4 }
  0x8c   : > { %v202_v6 = vpop.permute.xlu0 %201 }
  0x8d   : > { %v204_v7 = vadd.f32 %v202_v6, %v199_v5 }
  0x8f   : > { %205 = vst [vmem:[%s191_s21] sm:$0xff] %v204_v7 }
  0x90 PF: > { %s12_s11 = sadd.s32 1, %s365_s11   ;;  %s420_s9 = smov %s361_s10 }
  0x91   : > { %p9_p5 = scmp.ge.s32.totalorder %s12_s11, 4   ;;  %s421_s10 = smov %s423_s12 }
  0x93   :  { %11 = sbr.rel (!%p9_p5) target bundleno = 2 (0x2), region = 61 }

</bundles_post_ra>
